<compile_context>
chip_gen: v6e
topology: v6e:2x2x1
jax: 0.10.0
libtpu: 0.0.40
codegen_flags: <defaults>
</compile_context>

<pallas_src>
from math import sqrt

import jax
import jax.numpy as jnp
from jax.experimental import pallas as pl
from jax.experimental.pallas import tpu as pltpu


def _layernorm_f32(x, gamma, beta, eps=1e-5):
    # x: (T, C) fp32; gamma/beta: (1, C). Biased variance, matching nn.LayerNorm.
    mean = jnp.mean(x, axis=-1, keepdims=True)
    var = jnp.mean((x - mean) ** 2, axis=-1, keepdims=True)
    return (x - mean) * jax.lax.rsqrt(var + eps) * gamma + beta


def _gelu_exact_f32(x):
    # F.gelu default (approximate='none'): 0.5*x*(1+erf(x/sqrt(2))), in fp32.
    return 0.5 * x * (1.0 + jax.lax.erf(x * (1.0 / sqrt(2.0))))


def transformer_block_kernel(
    x_ref,                       # (1, T, C)  fp32
    g1_ref, b1_ref,              # layernorm_1 gamma/beta: (1, C) fp32
    wq_ref, wk_ref, wv_ref,      # per-head qkv weights: (H, C, dh) bf16
                                 #   (wq already scaled by 1/sqrt(dh))
    wo_ref, bo_ref,              # out proj: (H, dh, C) bf16, (1, C) fp32
    g2_ref, b2_ref,              # layernorm_2 gamma/beta: (1, C) fp32
    w1_ref, bb1_ref,             # MLP: (C, D) bf16, (1, D) fp32
    w2_ref, bb2_ref,             # MLP: (D, C) bf16, (1, C) fp32
    o_ref,                       # (1, T, C)
):
    f32 = jnp.float32
    bf16 = jnp.bfloat16

    x = x_ref[0].astype(f32)                       # (T, C)
    T, C = x.shape
    H = wq_ref.shape[0]

    # ---------------- attention branch (pre-LN) ----------------
    xn = _layernorm_f32(x, g1_ref[...], b1_ref[...])
    # Materialized once per grid step (not in a loop); keeps the projections as
    # true head-batched matmuls (no post-hoc transpose of (T, H, dh)).
    xn_b = jnp.broadcast_to(xn.astype(bf16)[None], (H, T, C))     # (H, T, C) bf16

    # Batched per-head projections: bf16 operands, fp32 MXU accumulation.
    q = jnp.einsum('htc,hcd->htd', xn_b, wq_ref[...],
                   preferred_element_type=f32).astype(bf16)       # scale pre-folded
    k = jnp.einsum('htc,hcd->htd', xn_b, wk_ref[...],
                   preferred_element_type=f32).astype(bf16)
    v = jnp.einsum('htc,hcd->htd', xn_b, wv_ref[...],
                   preferred_element_type=f32).astype(bf16)

    scores = jnp.einsum('htd,hsd->hts', q, k,
                        preferred_element_type=f32)               # (H, T, T) fp32

    # causal mask (mask_type == 'causal'): col <= row
    row = jax.lax.broadcasted_iota(jnp.int32, (T, T), 0)
    col = jax.lax.broadcasted_iota(jnp.int32, (T, T), 1)
    causal = col <= row                                           # (T, T) -> bcast over H
    scores = jnp.where(causal, scores, -jnp.inf)

    # Deferred-normalization softmax (stats in fp32).
    m = jnp.max(scores, axis=-1, keepdims=True)                   # (H, T, 1)
    p = jnp.exp(scores - m)                                       # unnormalized probs
    denom = jnp.sum(p, axis=-1, keepdims=True)                    # (H, T, 1)

    ctx = jnp.einsum('hts,hsd->htd', p.astype(bf16), v,
                     preferred_element_type=f32)                  # (H, T, dh) fp32
    # Normalize the small (H, T, dh) context instead of the (H, T, T) probs;
    # reciprocal goes to the EUP slot (nearly free).
    ctx = ctx * pl.reciprocal(denom, approx=True)

    # Per-head output projection, summed over heads: equivalent to concat+Wout.
    y = jnp.einsum('htd,hdc->htc', ctx.astype(bf16), wo_ref[...],
                   preferred_element_type=f32)                    # (H, T, C)
    attn = jnp.sum(y, axis=0) + bo_ref[...]                       # (T, C)
    # attn/resid dropout: identity (eval)
    x1 = x + attn

    # ---------------- MLP branch (pre-LN) ----------------
    xn2 = _layernorm_f32(x1, g2_ref[...], b2_ref[...])
    h1 = jnp.dot(xn2.astype(bf16), w1_ref[...],
                 preferred_element_type=f32) + bb1_ref[...]       # (T, D)
    h1 = _gelu_exact_f32(h1)
    h2 = jnp.dot(h1.astype(bf16), w2_ref[...],
                 preferred_element_type=f32) + bb2_ref[...]       # (T, C)
    # mlp dropout: identity (eval)
    o_ref[0] = (x1 + h2).astype(o_ref.dtype)


def prepare_kernel_params(p, n_heads):
    """Pre-permute / pre-scale / bf16-cast weights into kernel layouts."""
    C = p["wout"].shape[0]
    dh = C // n_heads
    bf16 = jnp.bfloat16

    def per_head_in(w):  # (C, C) column-head-major -> (H, C, dh)
        return jnp.transpose(w.reshape(C, n_heads, dh), (1, 0, 2))

    wq = p["wqkv"][:, 0 * C:1 * C]
    wk = p["wqkv"][:, 1 * C:2 * C]
    wv = p["wqkv"][:, 2 * C:3 * C]
    return {
        "g1": p["g1"], "beta1": p["beta1"],
        "wq": (per_head_in(wq) * (1.0 / sqrt(dh))).astype(bf16),  # fold 1/sqrt(dh)
        "wk": per_head_in(wk).astype(bf16),
        "wv": per_head_in(wv).astype(bf16),
        "wout": p["wout"].reshape(n_heads, dh, C).astype(bf16),   # rows are head-major
        "bout": p["bout"],
        "g2": p["g2"], "beta2": p["beta2"],
        "w1": p["w1"].astype(bf16), "b1": p["b1"],
        "w2": p["w2"].astype(bf16), "b2": p["b2"],
    }


def transformer_block(x, kp, n_heads):
    B, T, C = x.shape
    H = n_heads
    dh = C // H
    D = kp["w1"].shape[1]

    def full(shape):
        zeros = (0,) * len(shape)
        return pl.BlockSpec(shape, lambda b, _z=zeros: _z)   # constant block index

    in_specs = [
        pl.BlockSpec((1, T, C), lambda b: (b, 0, 0)),   # x
        full((1, C)), full((1, C)),                     # ln1 gamma/beta
        full((H, C, dh)), full((H, C, dh)), full((H, C, dh)),   # Wq, Wk, Wv
        full((H, dh, C)), full((1, C)),                 # Wout (per-head), bout
        full((1, C)), full((1, C)),                     # ln2 gamma/beta
        full((C, D)), full((1, D)),                     # W1, b1
        full((D, C)), full((1, C)),                     # W2, b2
    ]
    out_spec = pl.BlockSpec((1, T, C), lambda b: (b, 0, 0))

    # --- VMEM budget (weights + double-buffered I/O + activations) ---
    w_bytes = (3 * H * C * dh + H * dh * C + C * D + D * C) * 2          # bf16
    bias_bytes = (5 * C + D) * 4
    io_bytes = 2 * 2 * (T * C * 4)                                       # x/out, 2-buf
    act_bytes = (2 * H * T * C + 3 * H * T * dh + 2 * H * T * T
                 + T * D + 4 * T * C) * 4
    vmem_limit = int(min(max(2 * (w_bytes + bias_bytes) + io_bytes + 2 * act_bytes,
                             32 * 1024 * 1024),
                         56 * 1024 * 1024))

    flops = 2 * B * T * C * (3 * C + C + 2 * D) + 4 * B * H * T * T * dh
    transcendentals = B * H * T * T + B * T * D
    bytes_accessed = (2 * B * T * C * 4 + w_bytes + bias_bytes)

    return pl.pallas_call(
        transformer_block_kernel,
        out_shape=jax.ShapeDtypeStruct((B, T, C), x.dtype),
        grid_spec=pltpu.PrefetchScalarGridSpec(
            num_scalar_prefetch=0,
            grid=(B,),
            in_specs=in_specs,
            out_specs=out_spec,
        ),
        compiler_params=pltpu.CompilerParams(
            dimension_semantics=("parallel",),
            vmem_limit_bytes=vmem_limit,
        ),
        cost_estimate=pl.CostEstimate(
            flops=int(flops),
            transcendentals=int(transcendentals),
            bytes_accessed=int(bytes_accessed),
        ),
    )(
        x,
        kp["g1"], kp["beta1"],
        kp["wq"], kp["wk"], kp["wv"],
        kp["wout"], kp["bout"],
        kp["g2"], kp["beta2"],
        kp["w1"], kp["b1"],
        kp["w2"], kp["b2"],
    )


def init_params(key, d_model, d_mlp):
    ks = jax.random.split(key, 6)
    s = 0.02
    return {
        "g1": jnp.ones((1, d_model), jnp.float32),
        "beta1": jnp.zeros((1, d_model), jnp.float32),
        # Linear weights already transposed to (in, out)
        "wqkv": s * jax.random.normal(ks[0], (d_model, 3 * d_model), jnp.float32),
        "wout": s * jax.random.normal(ks[1], (d_model, d_model), jnp.float32),
        "bout": s * jax.random.normal(ks[2], (1, d_model), jnp.float32),
        "g2": jnp.ones((1, d_model), jnp.float32),
        "beta2": jnp.zeros((1, d_model), jnp.float32),
        "w1": s * jax.random.normal(ks[3], (d_model, d_mlp), jnp.float32),
        "b1": s * jax.random.normal(ks[4], (1, d_mlp), jnp.float32),
        "w2": s * jax.random.normal(ks[5], (d_mlp, d_model), jnp.float32),
        "b2": jnp.zeros((1, d_model), jnp.float32),
    }


def reference_block(x, p, n_heads):
    # Pure-JAX fp32 reference mirroring the PyTorch forward (eval mode).
    def ln(z, g, b):
        m = jnp.mean(z, -1, keepdims=True)
        v = jnp.mean((z - m) ** 2, -1, keepdims=True)
        return (z - m) / jnp.sqrt(v + 1e-5) * g + b

    B, T, C = x.shape
    dh = C // n_heads
    xn = ln(x, p["g1"], p["beta1"])
    qkv = xn @ p["wqkv"]
    q, k, v = jnp.split(qkv, 3, axis=-1)
    q = q.reshape(B, T, n_heads, dh).transpose(0, 2, 1, 3)
    k = k.reshape(B, T, n_heads, dh).transpose(0, 2, 1, 3)
    v = v.reshape(B, T, n_heads, dh).transpose(0, 2, 1, 3)
    att = (q @ jnp.swapaxes(k, -2, -1)) / sqrt(dh)
    mask = jnp.tril(jnp.ones((T, T), bool))
    att = jnp.where(mask, att, -jnp.inf)
    att = jax.nn.softmax(att, axis=-1)
    o = (att @ v).transpose(0, 2, 1, 3).reshape(B, T, C)
    x1 = x + (o @ p["wout"] + p["bout"])
    xn2 = ln(x1, p["g2"], p["beta2"])
    h = jax.nn.gelu(xn2 @ p["w1"] + p["b1"], approximate=False)
    return x1 + (h @ p["w2"] + p["b2"])


if __name__ == "__main__":
    B, T, d_model, n_heads, d_mlp = 2, 8, 32, 4, 64  # n_ctx = T = 8
    key = jax.random.PRNGKey(0)
    kx, kparam = jax.random.split(key)
    x = jax.random.normal(kx, (B, T, d_model), jnp.float32)
    params = init_params(kparam, d_model, d_mlp)
    kernel_params = prepare_kernel_params(params, n_heads)

    out = transformer_block(x, kernel_params, n_heads)
    out = jax.block_until_ready(out)

    ref = reference_block(x, params, n_heads)
    # bf16 matmul operands + approx reciprocal => loosened tolerance vs fp32 ref.
    assert out.shape == ref.shape
    assert jnp.allclose(out, ref, atol=2e-2, rtol=2e-2), "mismatch vs reference"
    print("KERNEL_OK")
</pallas_src>

<mosaic_0001>
module attributes {stable_mosaic.version = 11 : i64} {
  func.func @transformer_block_kernel(%arg0: i32, %arg1: memref<1x8x32xf32, #tpu.memory_space<vmem>>, %arg2: memref<1x32xf32, #tpu.memory_space<vmem>>, %arg3: memref<1x32xf32, #tpu.memory_space<vmem>>, %arg4: memref<4x32x8xbf16, #tpu.memory_space<vmem>>, %arg5: memref<4x32x8xbf16, #tpu.memory_space<vmem>>, %arg6: memref<4x32x8xbf16, #tpu.memory_space<vmem>>, %arg7: memref<4x8x32xbf16, #tpu.memory_space<vmem>>, %arg8: memref<1x32xf32, #tpu.memory_space<vmem>>, %arg9: memref<1x32xf32, #tpu.memory_space<vmem>>, %arg10: memref<1x32xf32, #tpu.memory_space<vmem>>, %arg11: memref<32x64xbf16, #tpu.memory_space<vmem>>, %arg12: memref<1x64xf32, #tpu.memory_space<vmem>>, %arg13: memref<64x32xbf16, #tpu.memory_space<vmem>>, %arg14: memref<1x32xf32, #tpu.memory_space<vmem>>, %arg15: memref<1x8x32xf32, #tpu.memory_space<vmem>>) attributes {dimension_semantics = [#tpu.dimension_semantics<parallel>], iteration_bounds = array<i64: 2>, scalar_prefetch = 0 : i64, scratch_operands = 0 : i64, tpu.core_type = #tpu.core_type<tc>, window_params = [{transform_indices = @transform_0, window_bounds = array<i64: 1, 8, 32>}, {pipeline_mode = #tpu.pipeline_mode<synchronous>, transform_indices = @transform_1, window_bounds = array<i64: 1, 32>}, {pipeline_mode = #tpu.pipeline_mode<synchronous>, transform_indices = @transform_2, window_bounds = array<i64: 1, 32>}, {pipeline_mode = #tpu.pipeline_mode<synchronous>, transform_indices = @transform_3, window_bounds = array<i64: 4, 32, 8>}, {pipeline_mode = #tpu.pipeline_mode<synchronous>, transform_indices = @transform_4, window_bounds = array<i64: 4, 32, 8>}, {pipeline_mode = #tpu.pipeline_mode<synchronous>, transform_indices = @transform_5, window_bounds = array<i64: 4, 32, 8>}, {pipeline_mode = #tpu.pipeline_mode<synchronous>, transform_indices = @transform_6, window_bounds = array<i64: 4, 8, 32>}, {pipeline_mode = #tpu.pipeline_mode<synchronous>, transform_indices = @transform_7, window_bounds = array<i64: 1, 32>}, {pipeline_mode = #tpu.pipeline_mode<synchronous>, transform_indices = @transform_8, window_bounds = array<i64: 1, 32>}, {pipeline_mode = #tpu.pipeline_mode<synchronous>, transform_indices = @transform_9, window_bounds = array<i64: 1, 32>}, {pipeline_mode = #tpu.pipeline_mode<synchronous>, transform_indices = @transform_10, window_bounds = array<i64: 32, 64>}, {pipeline_mode = #tpu.pipeline_mode<synchronous>, transform_indices = @transform_11, window_bounds = array<i64: 1, 64>}, {pipeline_mode = #tpu.pipeline_mode<synchronous>, transform_indices = @transform_12, window_bounds = array<i64: 64, 32>}, {pipeline_mode = #tpu.pipeline_mode<synchronous>, transform_indices = @transform_13, window_bounds = array<i64: 1, 32>}, {transform_indices = @transform_14, window_bounds = array<i64: 1, 8, 32>}]} {
    %c0 = arith.constant 0 : index
    %c0_0 = arith.constant 0 : index
    %c0_1 = arith.constant 0 : index
    %0 = vector.load %arg1[%c0, %c0_0, %c0_1] : memref<1x8x32xf32, #tpu.memory_space<vmem>>, vector<1x8x32xf32>
    %1 = vector.shape_cast %0 : vector<1x8x32xf32> to vector<8x32xf32>
    %c0_2 = arith.constant 0 : index
    %c0_3 = arith.constant 0 : index
    %2 = vector.load %arg2[%c0_2, %c0_3] : memref<1x32xf32, #tpu.memory_space<vmem>>, vector<1x32xf32>
    %c0_4 = arith.constant 0 : index
    %c0_5 = arith.constant 0 : index
    %3 = vector.load %arg3[%c0_4, %c0_5] : memref<1x32xf32, #tpu.memory_space<vmem>>, vector<1x32xf32>
    %cst = arith.constant dense<0.000000e+00> : vector<8xf32>
    %4 = vector.multi_reduction <add>, %1, %cst [1] : vector<8x32xf32> to vector<8xf32>
    %5 = vector.shape_cast %4 : vector<8xf32> to vector<8x1xf32>
    %cst_6 = arith.constant 3.200000e+01 : f32
    %6 = vector.broadcast %cst_6 : f32 to vector<8x1xf32>
    %7 = arith.divf %5, %6 : vector<8x1xf32>
    %8 = vector.broadcast %7 : vector<8x1xf32> to vector<8x32xf32>
    %9 = arith.subf %1, %8 : vector<8x32xf32>
    %10 = arith.mulf %9, %9 : vector<8x32xf32>
    %cst_7 = arith.constant dense<0.000000e+00> : vector<8xf32>
    %11 = vector.multi_reduction <add>, %10, %cst_7 [1] : vector<8x32xf32> to vector<8xf32>
    %12 = vector.shape_cast %11 : vector<8xf32> to vector<8x1xf32>
    %cst_8 = arith.constant 3.200000e+01 : f32
    %13 = vector.broadcast %cst_8 : f32 to vector<8x1xf32>
    %14 = arith.divf %12, %13 : vector<8x1xf32>
    %15 = vector.broadcast %7 : vector<8x1xf32> to vector<8x32xf32>
    %16 = arith.subf %1, %15 : vector<8x32xf32>
    %cst_9 = arith.constant 9.99999974E-6 : f32
    %17 = vector.broadcast %cst_9 : f32 to vector<8x1xf32>
    %18 = arith.addf %14, %17 : vector<8x1xf32>
    %19 = math.rsqrt %18 : vector<8x1xf32>
    %20 = vector.broadcast %19 : vector<8x1xf32> to vector<8x32xf32>
    %21 = arith.mulf %16, %20 : vector<8x32xf32>
    %22 = vector.broadcast %2 : vector<1x32xf32> to vector<8x32xf32>
    %23 = arith.mulf %21, %22 : vector<8x32xf32>
    %24 = vector.broadcast %3 : vector<1x32xf32> to vector<8x32xf32>
    %25 = arith.addf %23, %24 : vector<8x32xf32>
    %26 = arith.truncf %25 : vector<8x32xf32> to vector<8x32xbf16>
    %27 = vector.shape_cast %26 : vector<8x32xbf16> to vector<1x8x32xbf16>
    %28 = vector.shape_cast %27 : vector<1x8x32xbf16> to vector<1x8x32xbf16>
    %29 = vector.broadcast %28 : vector<1x8x32xbf16> to vector<4x8x32xbf16>
    %c0_10 = arith.constant 0 : index
    %c0_11 = arith.constant 0 : index
    %c0_12 = arith.constant 0 : index
    %30 = vector.load %arg4[%c0_10, %c0_11, %c0_12] : memref<4x32x8xbf16, #tpu.memory_space<vmem>>, vector<4x32x8xbf16>
    "tpu.trace_start"() <{level = 10 : i32, message = "htc,hcd->htd"}> : () -> ()
    %cst_13 = arith.constant dense<0.000000e+00> : vector<4x8x8xf32>
    %31 = tpu.matmul %29, %30, %cst_13 {dimension_numbers = #tpu.dot_dimension_numbers<[2], [1], [1], [2], [0, 0, 0, 1, 1, 2], [0], [0]>} : vector<4x8x32xbf16>, vector<4x32x8xbf16>, vector<4x8x8xf32> -> vector<4x8x8xf32>
    "tpu.trace_stop"() : () -> ()
    %32 = arith.truncf %31 : vector<4x8x8xf32> to vector<4x8x8xbf16>
    %c0_14 = arith.constant 0 : index
    %c0_15 = arith.constant 0 : index
    %c0_16 = arith.constant 0 : index
    %33 = vector.load %arg5[%c0_14, %c0_15, %c0_16] : memref<4x32x8xbf16, #tpu.memory_space<vmem>>, vector<4x32x8xbf16>
    "tpu.trace_start"() <{level = 10 : i32, message = "htc,hcd->htd"}> : () -> ()
    %cst_17 = arith.constant dense<0.000000e+00> : vector<4x8x8xf32>
    %34 = tpu.matmul %29, %33, %cst_17 {dimension_numbers = #tpu.dot_dimension_numbers<[2], [1], [1], [2], [0, 0, 0, 1, 1, 2], [0], [0]>} : vector<4x8x32xbf16>, vector<4x32x8xbf16>, vector<4x8x8xf32> -> vector<4x8x8xf32>
    "tpu.trace_stop"() : () -> ()
    %35 = arith.truncf %34 : vector<4x8x8xf32> to vector<4x8x8xbf16>
    %c0_18 = arith.constant 0 : index
    %c0_19 = arith.constant 0 : index
    %c0_20 = arith.constant 0 : index
    %36 = vector.load %arg6[%c0_18, %c0_19, %c0_20] : memref<4x32x8xbf16, #tpu.memory_space<vmem>>, vector<4x32x8xbf16>
    "tpu.trace_start"() <{level = 10 : i32, message = "htc,hcd->htd"}> : () -> ()
    %cst_21 = arith.constant dense<0.000000e+00> : vector<4x8x8xf32>
    %37 = tpu.matmul %29, %36, %cst_21 {dimension_numbers = #tpu.dot_dimension_numbers<[2], [1], [1], [2], [0, 0, 0, 1, 1, 2], [0], [0]>} : vector<4x8x32xbf16>, vector<4x32x8xbf16>, vector<4x8x8xf32> -> vector<4x8x8xf32>
    "tpu.trace_stop"() : () -> ()
    %38 = arith.truncf %37 : vector<4x8x8xf32> to vector<4x8x8xbf16>
    "tpu.trace_start"() <{level = 10 : i32, message = "htd,hsd->hts"}> : () -> ()
    %cst_22 = arith.constant dense<0.000000e+00> : vector<4x8x8xf32>
    %39 = tpu.matmul %32, %35, %cst_22 {dimension_numbers = #tpu.dot_dimension_numbers<[2], [2], [1], [1], [0, 0, 0, 1, 1, 1], [0], [0]>} : vector<4x8x8xbf16>, vector<4x8x8xbf16>, vector<4x8x8xf32> -> vector<4x8x8xf32>
    "tpu.trace_stop"() : () -> ()
    %40 = tpu.iota {dimensions = array<i32: 0>} : vector<8x8xi32>
    %41 = tpu.iota {dimensions = array<i32: 1>} : vector<8x8xi32>
    %42 = arith.cmpi sle, %41, %40 : vector<8x8xi32>
    %cst_23 = arith.constant 0xFF800000 : f32
    %43 = vector.shape_cast %42 : vector<8x8xi1> to vector<1x8x8xi1>
    %44 = vector.broadcast %43 : vector<1x8x8xi1> to vector<4x8x8xi1>
    %45 = vector.broadcast %cst_23 : f32 to vector<4x8x8xf32>
    %46 = arith.select %44, %39, %45 : vector<4x8x8xi1>, vector<4x8x8xf32>
    %cst_24 = arith.constant dense<0xFF800000> : vector<4x8xf32>
    %47 = vector.multi_reduction <maximumf>, %46, %cst_24 [2] : vector<4x8x8xf32> to vector<4x8xf32>
    %48 = vector.shape_cast %47 : vector<4x8xf32> to vector<4x8x1xf32>
    %49 = vector.broadcast %48 : vector<4x8x1xf32> to vector<4x8x8xf32>
    %50 = arith.subf %46, %49 : vector<4x8x8xf32>
    %51 = math.exp %50 : vector<4x8x8xf32>
    %cst_25 = arith.constant dense<0.000000e+00> : vector<4x8xf32>
    %52 = vector.multi_reduction <add>, %51, %cst_25 [2] : vector<4x8x8xf32> to vector<4x8xf32>
    %53 = vector.shape_cast %52 : vector<4x8xf32> to vector<4x8x1xf32>
    %54 = arith.truncf %51 : vector<4x8x8xf32> to vector<4x8x8xbf16>
    "tpu.trace_start"() <{level = 10 : i32, message = "hts,hsd->htd"}> : () -> ()
    %cst_26 = arith.constant dense<0.000000e+00> : vector<4x8x8xf32>
    %55 = tpu.matmul %54, %38, %cst_26 {dimension_numbers = #tpu.dot_dimension_numbers<[2], [1], [1], [2], [0, 0, 0, 1, 1, 2], [0], [0]>} : vector<4x8x8xbf16>, vector<4x8x8xbf16>, vector<4x8x8xf32> -> vector<4x8x8xf32>
    "tpu.trace_stop"() : () -> ()
    %56 = tpu.reciprocal %53 {approx = true} : vector<4x8x1xf32> -> vector<4x8x1xf32>
    %57 = vector.broadcast %56 : vector<4x8x1xf32> to vector<4x8x8xf32>
    %58 = arith.mulf %55, %57 : vector<4x8x8xf32>
    %59 = arith.truncf %58 : vector<4x8x8xf32> to vector<4x8x8xbf16>
    %c0_27 = arith.constant 0 : index
    %c0_28 = arith.constant 0 : index
    %c0_29 = arith.constant 0 : index
    %60 = vector.load %arg7[%c0_27, %c0_28, %c0_29] : memref<4x8x32xbf16, #tpu.memory_space<vmem>>, vector<4x8x32xbf16>
    "tpu.trace_start"() <{level = 10 : i32, message = "htd,hdc->htc"}> : () -> ()
    %cst_30 = arith.constant dense<0.000000e+00> : vector<4x8x32xf32>
    %61 = tpu.matmul %59, %60, %cst_30 {dimension_numbers = #tpu.dot_dimension_numbers<[2], [1], [1], [2], [0, 0, 0, 1, 1, 2], [0], [0]>} : vector<4x8x8xbf16>, vector<4x8x32xbf16>, vector<4x8x32xf32> -> vector<4x8x32xf32>
    "tpu.trace_stop"() : () -> ()
    %cst_31 = arith.constant dense<0.000000e+00> : vector<8x32xf32>
    %62 = vector.multi_reduction <add>, %61, %cst_31 [0] : vector<4x8x32xf32> to vector<8x32xf32>
    %c0_32 = arith.constant 0 : index
    %c0_33 = arith.constant 0 : index
    %63 = vector.load %arg8[%c0_32, %c0_33] : memref<1x32xf32, #tpu.memory_space<vmem>>, vector<1x32xf32>
    %64 = vector.broadcast %63 : vector<1x32xf32> to vector<8x32xf32>
    %65 = arith.addf %62, %64 : vector<8x32xf32>
    %66 = arith.addf %1, %65 : vector<8x32xf32>
    %c0_34 = arith.constant 0 : index
    %c0_35 = arith.constant 0 : index
    %67 = vector.load %arg9[%c0_34, %c0_35] : memref<1x32xf32, #tpu.memory_space<vmem>>, vector<1x32xf32>
    %c0_36 = arith.constant 0 : index
    %c0_37 = arith.constant 0 : index
    %68 = vector.load %arg10[%c0_36, %c0_37] : memref<1x32xf32, #tpu.memory_space<vmem>>, vector<1x32xf32>
    %cst_38 = arith.constant dense<0.000000e+00> : vector<8xf32>
    %69 = vector.multi_reduction <add>, %66, %cst_38 [1] : vector<8x32xf32> to vector<8xf32>
    %70 = vector.shape_cast %69 : vector<8xf32> to vector<8x1xf32>
    %cst_39 = arith.constant 3.200000e+01 : f32
    %71 = vector.broadcast %cst_39 : f32 to vector<8x1xf32>
    %72 = arith.divf %70, %71 : vector<8x1xf32>
    %73 = vector.broadcast %72 : vector<8x1xf32> to vector<8x32xf32>
    %74 = arith.subf %66, %73 : vector<8x32xf32>
    %75 = arith.mulf %74, %74 : vector<8x32xf32>
    %cst_40 = arith.constant dense<0.000000e+00> : vector<8xf32>
    %76 = vector.multi_reduction <add>, %75, %cst_40 [1] : vector<8x32xf32> to vector<8xf32>
    %77 = vector.shape_cast %76 : vector<8xf32> to vector<8x1xf32>
    %cst_41 = arith.constant 3.200000e+01 : f32
    %78 = vector.broadcast %cst_41 : f32 to vector<8x1xf32>
    %79 = arith.divf %77, %78 : vector<8x1xf32>
    %80 = vector.broadcast %72 : vector<8x1xf32> to vector<8x32xf32>
    %81 = arith.subf %66, %80 : vector<8x32xf32>
    %cst_42 = arith.constant 9.99999974E-6 : f32
    %82 = vector.broadcast %cst_42 : f32 to vector<8x1xf32>
    %83 = arith.addf %79, %82 : vector<8x1xf32>
    %84 = math.rsqrt %83 : vector<8x1xf32>
    %85 = vector.broadcast %84 : vector<8x1xf32> to vector<8x32xf32>
    %86 = arith.mulf %81, %85 : vector<8x32xf32>
    %87 = vector.broadcast %67 : vector<1x32xf32> to vector<8x32xf32>
    %88 = arith.mulf %86, %87 : vector<8x32xf32>
    %89 = vector.broadcast %68 : vector<1x32xf32> to vector<8x32xf32>
    %90 = arith.addf %88, %89 : vector<8x32xf32>
    %91 = arith.truncf %90 : vector<8x32xf32> to vector<8x32xbf16>
    %c0_43 = arith.constant 0 : index
    %c0_44 = arith.constant 0 : index
    %92 = vector.load %arg11[%c0_43, %c0_44] : memref<32x64xbf16, #tpu.memory_space<vmem>>, vector<32x64xbf16>
    %cst_45 = arith.constant dense<0.000000e+00> : vector<8x64xf32>
    %93 = tpu.matmul %91, %92, %cst_45 {dimension_numbers = #tpu.dot_dimension_numbers<[1], [0], [0], [1], [0, 0, 1, 1], [], []>} : vector<8x32xbf16>, vector<32x64xbf16>, vector<8x64xf32> -> vector<8x64xf32>
    %c0_46 = arith.constant 0 : index
    %c0_47 = arith.constant 0 : index
    %94 = vector.load %arg12[%c0_46, %c0_47] : memref<1x64xf32, #tpu.memory_space<vmem>>, vector<1x64xf32>
    %95 = vector.broadcast %94 : vector<1x64xf32> to vector<8x64xf32>
    %96 = arith.addf %93, %95 : vector<8x64xf32>
    %cst_48 = arith.constant 5.000000e-01 : f32
    %97 = vector.broadcast %cst_48 : f32 to vector<8x64xf32>
    %98 = arith.mulf %97, %96 : vector<8x64xf32>
    %cst_49 = arith.constant 0.707106769 : f32
    %99 = vector.broadcast %cst_49 : f32 to vector<8x64xf32>
    %100 = arith.mulf %96, %99 : vector<8x64xf32>
    %101 = math.erf %100 : vector<8x64xf32>
    %cst_50 = arith.constant 1.000000e+00 : f32
    %102 = vector.broadcast %cst_50 : f32 to vector<8x64xf32>
    %103 = arith.addf %102, %101 : vector<8x64xf32>
    %104 = arith.mulf %98, %103 : vector<8x64xf32>
    %105 = arith.truncf %104 : vector<8x64xf32> to vector<8x64xbf16>
    %c0_51 = arith.constant 0 : index
    %c0_52 = arith.constant 0 : index
    %106 = vector.load %arg13[%c0_51, %c0_52] : memref<64x32xbf16, #tpu.memory_space<vmem>>, vector<64x32xbf16>
    %cst_53 = arith.constant dense<0.000000e+00> : vector<8x32xf32>
    %107 = tpu.matmul %105, %106, %cst_53 {dimension_numbers = #tpu.dot_dimension_numbers<[1], [0], [0], [1], [0, 0, 1, 1], [], []>} : vector<8x64xbf16>, vector<64x32xbf16>, vector<8x32xf32> -> vector<8x32xf32>
    %c0_54 = arith.constant 0 : index
    %c0_55 = arith.constant 0 : index
    %108 = vector.load %arg14[%c0_54, %c0_55] : memref<1x32xf32, #tpu.memory_space<vmem>>, vector<1x32xf32>
    %109 = vector.broadcast %108 : vector<1x32xf32> to vector<8x32xf32>
    %110 = arith.addf %107, %109 : vector<8x32xf32>
    %111 = arith.addf %66, %110 : vector<8x32xf32>
    %c0_56 = arith.constant 0 : index
    %c0_57 = arith.constant 0 : index
    %c0_58 = arith.constant 0 : index
    %112 = vector.load %arg15[%c0_56, %c0_57, %c0_58] : memref<1x8x32xf32, #tpu.memory_space<vmem>>, vector<1x8x32xf32>
    %113 = vector.shape_cast %112 : vector<1x8x32xf32> to vector<8x32xf32>
    %114 = vector.shape_cast %111 : vector<8x32xf32> to vector<1x8x32xf32>
    tpu.vector_store %arg15[%c0_56, %c0_57, %c0_58], %114 {strides = array<i32>} : memref<1x8x32xf32, #tpu.memory_space<vmem>>, vector<1x8x32xf32>,
    return
  }
  func.func @transform_0(%arg0: i32) -> (i32, i32, i32) {
    %c0_i32 = arith.constant 0 : i32
    %c0_i32_0 = arith.constant 0 : i32
    %c0_i32_1 = arith.constant 0 : i32
    return %arg0, %c0_i32, %c0_i32_0 : i32, i32, i32
  }
  func.func @transform_1(%arg0: i32) -> (i32, i32) {
    %c0_i32 = arith.constant 0 : i32
    %c0_i32_0 = arith.constant 0 : i32
    %c0_i32_1 = arith.constant 0 : i32
    return %c0_i32, %c0_i32_0 : i32, i32
  }
  func.func @transform_2(%arg0: i32) -> (i32, i32) {
    %c0_i32 = arith.constant 0 : i32
    %c0_i32_0 = arith.constant 0 : i32
    %c0_i32_1 = arith.constant 0 : i32
    return %c0_i32, %c0_i32_0 : i32, i32
  }
  func.func @transform_3(%arg0: i32) -> (i32, i32, i32) {
    %c0_i32 = arith.constant 0 : i32
    %c0_i32_0 = arith.constant 0 : i32
    %c0_i32_1 = arith.constant 0 : i32
    %c0_i32_2 = arith.constant 0 : i32
    return %c0_i32, %c0_i32_0, %c0_i32_1 : i32, i32, i32
  }
  func.func @transform_4(%arg0: i32) -> (i32, i32, i32) {
    %c0_i32 = arith.constant 0 : i32
    %c0_i32_0 = arith.constant 0 : i32
    %c0_i32_1 = arith.constant 0 : i32
    %c0_i32_2 = arith.constant 0 : i32
    return %c0_i32, %c0_i32_0, %c0_i32_1 : i32, i32, i32
  }
  func.func @transform_5(%arg0: i32) -> (i32, i32, i32) {
    %c0_i32 = arith.constant 0 : i32
    %c0_i32_0 = arith.constant 0 : i32
    %c0_i32_1 = arith.constant 0 : i32
    %c0_i32_2 = arith.constant 0 : i32
    return %c0_i32, %c0_i32_0, %c0_i32_1 : i32, i32, i32
  }
  func.func @transform_6(%arg0: i32) -> (i32, i32, i32) {
    %c0_i32 = arith.constant 0 : i32
    %c0_i32_0 = arith.constant 0 : i32
    %c0_i32_1 = arith.constant 0 : i32
    %c0_i32_2 = arith.constant 0 : i32
    return %c0_i32, %c0_i32_0, %c0_i32_1 : i32, i32, i32
  }
  func.func @transform_7(%arg0: i32) -> (i32, i32) {
    %c0_i32 = arith.constant 0 : i32
    %c0_i32_0 = arith.constant 0 : i32
    %c0_i32_1 = arith.constant 0 : i32
    return %c0_i32, %c0_i32_0 : i32, i32
  }
  func.func @transform_8(%arg0: i32) -> (i32, i32) {
    %c0_i32 = arith.constant 0 : i32
    %c0_i32_0 = arith.constant 0 : i32
    %c0_i32_1 = arith.constant 0 : i32
    return %c0_i32, %c0_i32_0 : i32, i32
  }
  func.func @transform_9(%arg0: i32) -> (i32, i32) {
    %c0_i32 = arith.constant 0 : i32
    %c0_i32_0 = arith.constant 0 : i32
    %c0_i32_1 = arith.constant 0 : i32
    return %c0_i32, %c0_i32_0 : i32, i32
  }
  func.func @transform_10(%arg0: i32) -> (i32, i32) {
    %c0_i32 = arith.constant 0 : i32
    %c0_i32_0 = arith.constant 0 : i32
    %c0_i32_1 = arith.constant 0 : i32
    return %c0_i32, %c0_i32_0 : i32, i32
  }
  func.func @transform_11(%arg0: i32) -> (i32, i32) {
    %c0_i32 = arith.constant 0 : i32
    %c0_i32_0 = arith.constant 0 : i32
    %c0_i32_1 = arith.constant 0 : i32
    return %c0_i32, %c0_i32_0 : i32, i32
  }
  func.func @transform_12(%arg0: i32) -> (i32, i32) {
    %c0_i32 = arith.constant 0 : i32
    %c0_i32_0 = arith.constant 0 : i32
    %c0_i32_1 = arith.constant 0 : i32
    return %c0_i32, %c0_i32_0 : i32, i32
  }
  func.func @transform_13(%arg0: i32) -> (i32, i32) {
    %c0_i32 = arith.constant 0 : i32
    %c0_i32_0 = arith.constant 0 : i32
    %c0_i32_1 = arith.constant 0 : i32
    return %c0_i32, %c0_i32_0 : i32, i32
  }
  func.func @transform_14(%arg0: i32) -> (i32, i32, i32) {
    %c0_i32 = arith.constant 0 : i32
    %c0_i32_0 = arith.constant 0 : i32
    %c0_i32_1 = arith.constant 0 : i32
    return %arg0, %c0_i32, %c0_i32_0 : i32, i32, i32
  }
}

</mosaic_0001>

<bundles_post_ra>
// kernel: tpu_custom_call.1
= control target key start
LH: loop header
LB: loop body
LE: loop exit
PB: predicated region body
PF: predicated region fallthrough
CT: control target
= control target key end

     0   :  { %s3040_s0 = inlined_call_operand.vmem [shape: f32[2,8,32], index: 0, kind: input, shape index: {}]   ;;  %s3041_s1 = inlined_call_operand.vmem [shape: f32[1,32], index: 1, kind: input, shape index: {}]   ;;  %s3042_s2 = inlined_call_operand.vmem [shape: f32[1,32], index: 2, kind: input, shape index: {}]   ;;  %s3043_s3 = inlined_call_operand.vmem [shape: bf16[4,32,8], index: 3, kind: input, shape index: {}]   ;;  %s3044_s4 = inlined_call_operand.vmem [shape: bf16[4,32,8], index: 4, kind: input, shape index: {}]   ;;  %s3045_s5 = inlined_call_operand.vmem [shape: bf16[4,32,8], index: 5, kind: input, shape index: {}]   ;;  %s3046_s6 = inlined_call_operand.vmem [shape: bf16[4,8,32], index: 6, kind: input, shape index: {}]   ;;  %s3047_s7 = inlined_call_operand.vmem [shape: f32[1,32], index: 7, kind: input, shape index: {}]   ;;  %s3048_s8 = inlined_call_operand.vmem [shape: f32[1,32], index: 8, kind: input, shape index: {}]   ;;  %s3049_s9 = inlined_call_operand.vmem [shape: f32[1,32], index: 9, kind: input, shape index: {}]   ;;  %s3050_s10 = inlined_call_operand.vmem [shape: bf16[32,64], index: 10, kind: input, shape index: {}]   ;;  %s3051_s11 = inlined_call_operand.vmem [shape: f32[1,64], index: 11, kind: input, shape index: {}]   ;;  %s3052_s12 = inlined_call_operand.vmem [shape: bf16[64,32], index: 12, kind: input, shape index: {}]   ;;  %s3053_s13 = inlined_call_operand.vmem [shape: f32[1,32], index: 13, kind: input, shape index: {}]   ;;  %s3054_s14 = inlined_call_operand.hbm [shape: f32[2,8,32], index: 14, kind: output, shape index: {}]  }
   0x1   :  { %3055 = sst [smem:[#allocation5_spill]] %s3040_s0 }
   0x2   :  { %3056 = sst [smem:[#allocation6_spill]] %s3041_s1 }
   0x3   :  { %3057 = sst [smem:[#allocation7_spill]] %s3042_s2 }
   0x4   :  { %3058 = sst [smem:[#allocation8_spill]] %s3043_s3 }
   0x5   :  { %19 = vsyncpa [#allocation3], 0 }
   0x6   :  { %21 = vsyncpa [#allocation3 + $0x1], 0  ;;  %s2643_s29 = smov 0   ;;  %s2645_s30 = smov 0  }
   0x7   :  { %s2647_s15 = smov 0   ;;  %s2649_s16 = smov 0  }
   0x8 LB: > { %s2664_s17 = sadd.s32 4294967295, %s2563_s16   ;;  %s2081_s18 = sadd.s32 4294967294, %s2563_s16   ;;  %s2563_s16 = sphi %s2649_s16, %s3068_s16   ;;  %s2559_s15 = sphi %s2647_s15, %s3067_s15   ;;  %s2555_s30 = sphi %s2645_s30, %s3066_s30   ;;  %s2551_s29 = sphi %s2643_s29, %s3065_s29  }
   0x9   : > { %s2668_s19 = sadd.s32 1, %s2563_s16   ;;  %s333_s20 = sadd.s32 1, %s2559_s15 }
   0xa   : > { %s330_s21 = ssub.s32 %s2563_s16, %s2668_s19  ;;  %p343_p0 = scmp.ne.s32.totalorder %s2559_s15, %s2555_s30 }
   0xb   : > { %p331_p1 = scmp.eq.s32.totalorder %s330_s21, 0  ;;  %p344_p2 = scmp.eq.s32.totalorder %s2664_s17, 1 }
   0xc   : > { %p349_p3 = scmp.ne.s32.totalorder %s2555_s30, %s2551_s29  ;;  %p350_p4 = scmp.eq.s32.totalorder %s2081_s18, 1 }
   0xd   : > { %s2679_s22 = scalar_select %p331_p1, %s2559_s15, %s333_s20  }
   0xe   : > { %p2681_p5 = por %p344_p2, %p343_p0  ;;  %p2685_p6 = por %p350_p4, %p349_p3 }
   0xf   : > { %p2084_p7 = scmp.ge.s32.totalorder %s2563_s16, 1  ;;  %p414_p8 = scmp.lt.s32.totalorder %s2563_s16, 3 }
  0x11   : > { %p415_p9 = pnand %p2084_p7, %p414_p8 }
  0x12   : > { %p459_p10 = scmp.lt.s32.totalorder (!%p415_p9), %s2664_s17, 1  ;;  %s3061_s0 = sld [smem:[#allocation5_spill]] (!%p415_p9) }
  0x13   : > { %418 = sbr.rel (%p415_p9) target bundleno = 2058 (0x80a), region = 76  ;;  %s3062_s3 = sld [smem:[#allocation8_spill]] (!%p415_p9) }
  0x14   : > { %s3063_s1 = sld [smem:[#allocation6_spill]] (!%p415_p9)  ;;  %s456_s21 = sand.u32 (!%p415_p9), 1, %s2555_s30  }
  0x15   : > { %s3064_s2 = sld [smem:[#allocation7_spill]] (!%p415_p9) }
  0x18   : > { %s460_s25 = scalar_select %p459_p10, %s2664_s17, 1  ;;  %vm467_vm0 = vcmask 261120   ;;  %v2565_v9 = vmov 0.0   ;;  %vm2566_vm1 = vmmov 0   ;;  %v2459_v26 = vld [vmem:[%s3044_s4 + $0x8] sm:$0xff]   ;;  %v2460_v27 = vld [vmem:[%s3044_s4 + $0x18] sm:$0xff]  }
  0x19   : > { %v2451_v7 = vld [vmem:[%s3062_s3 + $0x8] sm:$0xff]   ;;  %v2452_v8 = vld [vmem:[%s3062_s3 + $0x18] sm:$0xff]   ;;  %2222 = vmatprep.subr.bf16.mxu0 %v2565_v9  ;;  %2230 = vmatprep.subr.bf16.mxu1 %v2565_v9  ;;  %v2453_v10 = vld [vmem:[%s3062_s3] sm:$0xff]   ;;  %vm1184_vm2 = vcmask 64512   ;;  %vm1423_vm3 = vcmask 1043456   ;;  %vm1962_vm5 = vcmask 523264  }
  0x1a   : > { %s2086_s26 = sshll.u32 %s460_s25, 3  ;;  %2223 = vmatpush3.bf16.msra.mxu0 %v2451_v7  ;;  %2231 = vmatpush3.bf16.msra.mxu1 %v2452_v8  ;;  %v2454_v11 = vld [vmem:[%s3062_s3 + $0x10] sm:$0xff]   ;;  %v2087_v16 = vld [vmem:[%s3063_s1] ss:$0 sm:$0xff]  ;;  %v2455_v21 = vld [vmem:[%s3062_s3 + $0x28] sm:$0xff]   ;;  %s2085_s25 = sshll.u32 %s456_s21, 3 }
  0x1b   : > { %s462_s18 = scalar_lea.vmem %s3061_s0, %s2086_s26  ;;  %2224 = vmatprep.subr.bf16.mxu0 %v2565_v9  ;;  %2232 = vmatprep.subr.bf16.mxu1 %v2565_v9  ;;  %v2088_v18 = vld [vmem:[%s3064_s2] ss:$0 sm:$0xff]  ;;  %v2456_v22 = vld [vmem:[%s3062_s3 + $0x38] sm:$0xff]   ;;  %v2458_v25 = vld [vmem:[%s3062_s3 + $0x30] sm:$0xff]   ;;  %s2151_s0 = sshll.u32 %s2664_s17, 7 }
  0x1c   : > { %v2696_v0 = vld [vmem:[%s462_s18] sm:$0xff]  ;;  %2226 = vmatprep.mubr.msk.bf16.mxu0 %vm2566_vm1, %v2565_v9  ;;  %2234 = vmatprep.mubr.msk.bf16.mxu1 %vm2566_vm1, %v2565_v9  ;;  %v2462_v29 = vld [vmem:[%s3044_s4 + $0x10] sm:$0xff]   ;;  %v2463_v30 = vld [vmem:[%s3044_s4 + $0x28] sm:$0xff]   ;;  %s458_s28 = scalar_lea.vmem [#allocation2], %s2085_s25  ;;  %s2998_s2 = scalar_lea.hbm %s3054_s14, %s2151_s0 }
  0x1d   : > { %v468_v1 = vsel %vm467_vm0, %v2696_v0, 0.0  ;;  %v2457_v24 = vld [vmem:[%s3062_s3 + $0x20] sm:$0xff]   ;;  %v2464_v31 = vld [vmem:[%s3044_s4 + $0x38] sm:$0xff]   ;;  %v2466_v33 = vld [vmem:[%s3044_s4 + $0x30] sm:$0xff]   ;;  %s2022_s18 = sshll.u32 %s458_s28, 4  ;;  %s2009_s17 = scalar_lea.sflag [#allocation3], %s456_s21  ;;  %s3000_s18 = int_to_ptr.vmem [resolvable:$true] %s2022_s18 }
  0x1e   : > { %469 = vadd.xlane.f32.xlu0 %v468_v1  ;;  %2225 = vmatpush3.bf16.msra.mxu0 %v2453_v10  ;;  %v2461_v28 = vld [vmem:[%s3044_s4] sm:$0xff]   ;;  %v2467_v34 = vld [vmem:[%s3045_s5 + $0x8] sm:$0xff]   ;;  %v2468_v35 = vld [vmem:[%s3045_s5 + $0x18] sm:$0xff]   ;;  %s2503_s25 = scalar_lea.vmem %s3000_s18, 128  ;;  %s2567_s26 = smov [#allocation2]  }
  0x1f   : > { %2233 = vmatpush3.bf16.msra.mxu1 %v2454_v11  ;;  %2238 = vmatprep.subr.bf16.mxu0 %v2565_v9  ;;  %v2465_v32 = vld [vmem:[%s3044_s4 + $0x20] sm:$0xff]   ;;  %v2470_v37 = vld [vmem:[%s3045_s5 + $0x10] sm:$0xff]   ;;  %v2471_v38 = vld [vmem:[%s3045_s5 + $0x28] sm:$0xff]   ;;  %p2504_p11 = scmp.ne.s32.totalorder %s3000_s18, %s2503_s25  ;;  %s2507_s27 = sshll.u32 %s2567_s26, 4  ;;  %s2508_s27 = int_to_ptr.vmem [resolvable:$false] %s2507_s27 }
  0x20   : > { %2246 = vmatprep.subr.bf16.mxu1 %v2565_v9  ;;  %v2469_v36 = vld [vmem:[%s3045_s5] sm:$0xff]   ;;  %v2472_v39 = vld [vmem:[%s3045_s5 + $0x38] sm:$0xff]   ;;  %v2474_v41 = vld [vmem:[%s3045_s5 + $0x30] sm:$0xff]   ;;  %s2509_s1 = scalar_lea.vmem %s2508_s27, 256  ;;  %p2510_p0 = scmp.lt.s32.totalorder %s3000_s18, %s2508_s27 }
  0x21   : > { %v2473_v40 = vld [vmem:[%s3045_s5 + $0x20] sm:$0xff]   ;;  %p2505_p12 = pnand %p2504_p11, %p2681_p5  ;;  %p2511_p1 = scmp.lt.s32.totalorder %s2509_s1, %s2503_s25 }
  0x23   : > { %p2506_p13 = pneg %p2505_p12  ;;  %p2512_p2 = por %p2511_p1, %p2510_p0 }
  0x25   : > { %p2513_p3 = pnand %p2512_p2, %p2506_p13 }
  0xa7   : > { %v470_v2 = vpop.xlane.xlu0 %469 }
  0xa8   : > { %v472_v3 = vmul.f32 0.03125, %v470_v2 }
  0xaa   : > { %v473_v4 = vsub.f32 %v2696_v0, %v472_v3 }
  0xac   : > { %v474_v5 = vmul.f32 %v473_v4, %v473_v4 }
  0xae   : > { %v475_v6 = vsel %vm467_vm0, %v474_v5, 0.0 }
  0xaf   : > { %476 = vadd.xlane.f32.xlu0 %v475_v6 }
 0x138   : > { %v477_v12 = vpop.xlane.xlu0 %476 }
 0x139   : > { %v478_v13 = vmul.f32 0.03125, %v477_v12 }
 0x13b   : > { %v479_v14 = vadd.f32 1e-05, %v478_v13 }
 0x13d   : > { %2481 = vrsqrt.f32 %v479_v14 }
 0x14a   : > { %v2482_v15 = vpop.eup %2481 }
 0x14b   : > { %v481_v17 = vmul.f32 %v2482_v15, %v473_v4 }
 0x14d   : > { %v488_v19 = vmul.f32 %v2087_v16, %v481_v17 }
 0x14f   : > { %v495_v20 = vadd.f32 %v2088_v18, %v488_v19 }
 0x151   : > { %v2736_v23 = vpack.c.bf16 %v495_v20, %v495_v20 }
 0x153   : > { %2227 = vmatmul.mubr.msk.bf16.vlgmr.msra.gmra.mxu0 %vm467_vm0, %v2736_v23  ;;  %2235 = vmatmul.mubr.msk.bf16.vlgmr.msra.gmra.mxu1 %vm467_vm0, %v2736_v23 }
 0x154   : > { %2239 = vmatpush3.bf16.msra.mxu0 %v2455_v21  ;;  %2247 = vmatpush3.bf16.msra.mxu1 %v2456_v22 }
 0x155   : > { %2240 = vmatprep.subr.bf16.mxu0 %v2565_v9  ;;  %2248 = vmatprep.subr.bf16.mxu1 %v2565_v9 }
 0x156   : > { %2242 = vmatprep.mubr.msk.bf16.mxu0 %vm2566_vm1, %v2565_v9  ;;  %2250 = vmatprep.mubr.msk.bf16.mxu1 %vm2566_vm1, %v2565_v9 }
 0x158   : > { %2241 = vmatpush3.bf16.msra.mxu0 %v2457_v24  ;;  %2249 = vmatpush3.bf16.msra.mxu1 %v2458_v25 }
 0x159   : > { %2254 = vmatprep.subr.bf16.mxu0 %v2565_v9  ;;  %2262 = vmatprep.subr.bf16.mxu1 %v2565_v9 }
 0x15b   : > { %2243 = vmatmul.mubr.msk.bf16.vlgmr.msra.gmra.mxu0 %vm467_vm0, %v2736_v23  ;;  %2251 = vmatmul.mubr.msk.bf16.vlgmr.msra.gmra.mxu1 %vm467_vm0, %v2736_v23 }
 0x15c   : > { %2255 = vmatpush3.bf16.msra.mxu0 %v2459_v26  ;;  %2263 = vmatpush3.bf16.msra.mxu1 %v2460_v27 }
 0x15d   : > { %2256 = vmatprep.subr.bf16.mxu0 %v2565_v9  ;;  %2264 = vmatprep.subr.bf16.mxu1 %v2565_v9 }
 0x15e   : > { %2258 = vmatprep.mubr.msk.bf16.mxu0 %vm2566_vm1, %v2565_v9  ;;  %2266 = vmatprep.mubr.msk.bf16.mxu1 %vm2566_vm1, %v2565_v9 }
 0x160   : > { %2257 = vmatpush3.bf16.msra.mxu0 %v2461_v28  ;;  %2265 = vmatpush3.bf16.msra.mxu1 %v2462_v29 }
 0x161   : > { %2270 = vmatprep.subr.bf16.mxu0 %v2565_v9  ;;  %2278 = vmatprep.subr.bf16.mxu1 %v2565_v9 }
 0x163   : > { %2259 = vmatmul.mubr.msk.bf16.vlgmr.msra.gmra.mxu0 %vm467_vm0, %v2736_v23  ;;  %2267 = vmatmul.mubr.msk.bf16.vlgmr.msra.gmra.mxu1 %vm467_vm0, %v2736_v23 }
 0x164   : > { %2271 = vmatpush3.bf16.msra.mxu0 %v2463_v30  ;;  %2279 = vmatpush3.bf16.msra.mxu1 %v2464_v31 }
 0x165   : > { %2272 = vmatprep.subr.bf16.mxu0 %v2565_v9  ;;  %2280 = vmatprep.subr.bf16.mxu1 %v2565_v9 }
 0x166   : > { %2274 = vmatprep.mubr.msk.bf16.mxu0 %vm2566_vm1, %v2565_v9  ;;  %2282 = vmatprep.mubr.msk.bf16.mxu1 %vm2566_vm1, %v2565_v9 }
 0x168   : > { %2273 = vmatpush3.bf16.msra.mxu0 %v2465_v32  ;;  %2281 = vmatpush3.bf16.msra.mxu1 %v2466_v33 }
 0x169   : > { %2286 = vmatprep.subr.bf16.mxu0 %v2565_v9  ;;  %2294 = vmatprep.subr.bf16.mxu1 %v2565_v9 }
 0x16b   : > { %2275 = vmatmul.mubr.msk.bf16.vlgmr.msra.gmra.mxu0 %vm467_vm0, %v2736_v23  ;;  %2283 = vmatmul.mubr.msk.bf16.vlgmr.msra.gmra.mxu1 %vm467_vm0, %v2736_v23 }
 0x16c   : > { %2287 = vmatpush3.bf16.msra.mxu0 %v2467_v34  ;;  %2295 = vmatpush3.bf16.msra.mxu1 %v2468_v35 }
 0x16d   : > { %2288 = vmatprep.subr.bf16.mxu0 %v2565_v9  ;;  %2296 = vmatprep.subr.bf16.mxu1 %v2565_v9 }
 0x16e   : > { %2290 = vmatprep.mubr.msk.bf16.mxu0 %vm2566_vm1, %v2565_v9  ;;  %2298 = vmatprep.mubr.msk.bf16.mxu1 %vm2566_vm1, %v2565_v9 }
 0x170   : > { %2289 = vmatpush3.bf16.msra.mxu0 %v2469_v36  ;;  %2297 = vmatpush3.bf16.msra.mxu1 %v2470_v37 }
 0x171   : > { %2302 = vmatprep.subr.bf16.mxu0 %v2565_v9  ;;  %2310 = vmatprep.subr.bf16.mxu1 %v2565_v9 }
 0x173   : > { %2291 = vmatmul.mubr.msk.bf16.vlgmr.msra.gmra.mxu0 %vm467_vm0, %v2736_v23  ;;  %2299 = vmatmul.mubr.msk.bf16.vlgmr.msra.gmra.mxu1 %vm467_vm0, %v2736_v23 }
 0x174   : > { %2303 = vmatpush3.bf16.msra.mxu0 %v2471_v38  ;;  %2311 = vmatpush3.bf16.msra.mxu1 %v2472_v39 }
 0x175   : > { %2304 = vmatprep.subr.bf16.mxu0 %v2565_v9  ;;  %2312 = vmatprep.subr.bf16.mxu1 %v2565_v9 }
 0x176   : > { %2306 = vmatprep.mubr.msk.bf16.mxu0 %vm2566_vm1, %v2565_v9  ;;  %2314 = vmatprep.mubr.msk.bf16.mxu1 %vm2566_vm1, %v2565_v9 }
 0x178   : > { %2305 = vmatpush3.bf16.msra.mxu0 %v2473_v40  ;;  %2313 = vmatpush3.bf16.msra.mxu1 %v2474_v41 }
 0x179   : > { %2318 = vmatprep.subr.bf16.mxu0 %v2565_v9  ;;  %2324 = vmatprep.subr.bf16.mxu1 %v2565_v9 }
 0x17b   : > { %2307 = vmatmul.mubr.msk.bf16.vlgmr.msra.gmra.mxu0 %vm467_vm0, %v2736_v23  ;;  %2315 = vmatmul.mubr.msk.bf16.vlgmr.msra.gmra.mxu1 %vm467_vm0, %v2736_v23 }
 0x17c   : > { %2320 = vmatprep.mubr.msk.bf16.mxu0 %vm2566_vm1, %v2565_v9  ;;  %2326 = vmatprep.mubr.msk.bf16.mxu1 %vm2566_vm1, %v2565_v9 }
 0x213   : > { %v562_v42 = vpop.f32.mrf.mxu0  ;;  %v614_v43 = vpop.f32.mrf.mxu1 }
 0x214   : > { %v724_v10 = vpack.c.bf16 %v562_v42, %v562_v42  ;;  %v725_v11 = vpack.c.bf16 %v614_v43, %v614_v43 }
 0x215   : > { %v2228_v44 = vpop.f32.mrf.mxu0  ;;  %v2236_v45 = vpop.f32.mrf.mxu1 }
 0x216   : > { %v1369_v44 = vlaneseq }
 0x217   : > { %v565_v46 = vpop.f32.mrf.mxu0  ;;  %v617_v47 = vpop.f32.mrf.mxu1 }
 0x218   : > { %v1370_v45 = vshrl.u32 %v1369_v44, 7  ;;  %v1372_v46 = vand.u32 127, %v1369_v44 }
 0x219   : > { %v2229_v48 = vpop.f32.mrf.mxu0  ;;  %v2237_v49 = vpop.f32.mrf.mxu1 }
 0x21a   : > { %vm1373_vm4 = vcmp.le.s32.totalorder %v1372_v46, %v1370_v45 }
 0x21b   : > { %v666_v50 = vpop.f32.mrf.mxu0  ;;  %v718_v51 = vpop.f32.mrf.mxu1 }
 0x21c   : > { %v726_v24 = vpack.c.bf16 %v666_v50, %v666_v50  ;;  %v727_v25 = vpack.c.bf16 %v718_v51, %v718_v51 }
 0x21d   : > { %v2244_v52 = vpop.f32.mrf.mxu0  ;;  %v2252_v53 = vpop.f32.mrf.mxu1 }
 0x21f   : > { %v669_v54 = vpop.f32.mrf.mxu0  ;;  %v721_v55 = vpop.f32.mrf.mxu1 }
 0x221   : > { %v2245_v56 = vpop.f32.mrf.mxu0  ;;  %v2253_v57 = vpop.f32.mrf.mxu1 }
 0x223   : > { %v790_v58 = vpop.f32.mrf.mxu0  ;;  %v842_v59 = vpop.f32.mrf.mxu1 }
 0x224   : > { %v952_v60 = vpack.c.bf16 %v790_v58, %v790_v58  ;;  %v953_v61 = vpack.c.bf16 %v842_v59, %v842_v59 }
 0x225   : > { %v2260_v62 = vpop.f32.mrf.mxu0  ;;  %v2268_v63 = vpop.f32.mrf.mxu1 }
 0x226   : > { %v1189_v1 = vsel %vm1184_vm2, %v952_v60, 0  ;;  %v1235_v2 = vsel %vm1184_vm2, %v953_v61, 0 }
 0x227   : > { %v793_v3 = vpop.f32.mrf.mxu0  ;;  %v845_v4 = vpop.f32.mrf.mxu1  ;;  %2319 = vmatpush3.bf16.xpose.msra.mxu0 %v1189_v1  ;;  %2325 = vmatpush3.bf16.xpose.msra.mxu1 %v1235_v2 }
 0x228   : > { %2330 = vmatprep.subr.bf16.mxu0 %v2565_v9  ;;  %2336 = vmatprep.subr.bf16.mxu1 %v2565_v9 }
 0x229   : > { %v2261_v5 = vpop.f32.mrf.mxu0  ;;  %v2269_v6 = vpop.f32.mrf.mxu1 }
 0x22b   : > { %v894_v7 = vpop.f32.mrf.mxu0  ;;  %v946_v8 = vpop.f32.mrf.mxu1 }
 0x22c   : > { %v954_v12 = vpack.c.bf16 %v894_v7, %v894_v7  ;;  %v955_v13 = vpack.c.bf16 %v946_v8, %v946_v8 }
 0x22d   : > { %v2276_v14 = vpop.f32.mrf.mxu0  ;;  %v2284_v15 = vpop.f32.mrf.mxu1 }
 0x22e   : > { %v1281_v16 = vsel %vm1184_vm2, %v954_v12, 0  ;;  %v1327_v17 = vsel %vm1184_vm2, %v955_v13, 0  ;;  %2321 = vmatmul.mubr.msk.bf16.vlgmr.msra.gmra.mxu0 %vm1184_vm2, %v724_v10  ;;  %2327 = vmatmul.mubr.msk.bf16.vlgmr.msra.gmra.mxu1 %vm1184_vm2, %v725_v11 }
 0x22f   : > { %v897_v18 = vpop.f32.mrf.mxu0  ;;  %v949_v19 = vpop.f32.mrf.mxu1  ;;  %2331 = vmatpush3.bf16.xpose.msra.mxu0 %v1281_v16  ;;  %2337 = vmatpush3.bf16.xpose.msra.mxu1 %v1327_v17 }
 0x230   : > { %2332 = vmatprep.mubr.msk.bf16.mxu0 %vm2566_vm1, %v2565_v9  ;;  %2338 = vmatprep.mubr.msk.bf16.mxu1 %vm2566_vm1, %v2565_v9 }
 0x231   : > { %v2277_v20 = vpop.f32.mrf.mxu0  ;;  %v2285_v21 = vpop.f32.mrf.mxu1  ;;  %2342 = vmatprep.subr.bf16.mxu0 %v2565_v9  ;;  %2348 = vmatprep.subr.bf16.mxu1 %v2565_v9 }
 0x233   : > { %v1018_v22 = vpop.f32.mrf.mxu0  ;;  %v1070_v23 = vpop.f32.mrf.mxu1 }
 0x234   : > { %v1180_v26 = vpack.c.bf16 %v1018_v22, %v1018_v22  ;;  %v1181_v27 = vpack.c.bf16 %v1070_v23, %v1070_v23 }
 0x235   : > { %v2292_v28 = vpop.f32.mrf.mxu0  ;;  %v2300_v29 = vpop.f32.mrf.mxu1 }
 0x236   : > { %v1425_v30 = vsel %vm1423_vm3, %v1180_v26, 0  ;;  %v1471_v31 = vsel %vm1423_vm3, %v1181_v27, 0  ;;  %2333 = vmatmul.mubr.msk.bf16.vlgmr.msra.gmra.mxu0 %vm1184_vm2, %v726_v24  ;;  %2339 = vmatmul.mubr.msk.bf16.vlgmr.msra.gmra.mxu1 %vm1184_vm2, %v727_v25 }
 0x237   : > { %v1021_v32 = vpop.f32.mrf.mxu0  ;;  %v1073_v33 = vpop.f32.mrf.mxu1  ;;  %2343 = vmatpush3.bf16.msra.mxu0 %v1425_v30  ;;  %2349 = vmatpush3.bf16.msra.mxu1 %v1471_v31 }
 0x238   : > { %2344 = vmatprep.mubr.msk.bf16.mxu0 %vm2566_vm1, %v2565_v9  ;;  %2354 = vmatprep.subr.bf16.mxu0 %v2565_v9 }
 0x239   : > { %v2293_v34 = vpop.f32.mrf.mxu0  ;;  %v2301_v35 = vpop.f32.mrf.mxu1  ;;  %2350 = vmatprep.mubr.msk.bf16.mxu1 %vm2566_vm1, %v2565_v9  ;;  %2360 = vmatprep.subr.bf16.mxu1 %v2565_v9 }
 0x23b   : > { %v1122_v36 = vpop.f32.mrf.mxu0  ;;  %v2884_v37 = vpop.f32.mrf.mxu1 }
 0x23c   : > { %v1182_v21 = vpack.c.bf16 %v1122_v36, %v1122_v36  ;;  %v1183_v26 = vpack.c.bf16 %v2884_v37, %v2884_v37  ;;  %v1617_v37 = vld [vmem:[%s3046_s6] sm:$0xf] }
 0x23d   : > { %v2308_v38 = vpop.f32.mrf.mxu0  ;;  %v2316_v39 = vpop.f32.mrf.mxu1 }
 0x23e   : > { %v1517_v25 = vsel %vm1423_vm3, %v1182_v21, 0  ;;  %v1563_v30 = vsel %vm1423_vm3, %v1183_v26, 0  ;;  %v1625_v38 = vsel %vm1423_vm3, %v1617_v37, 0  ;;  %v1618_v39 = vld [vmem:[%s3046_s6 + $0x4] sm:$0xf] }
 0x23f   : > { %v1125_v40 = vpop.f32.mrf.mxu0  ;;  %v1177_v41 = vpop.f32.mrf.mxu1 }
 0x240   : > { %v1671_v40 = vsel %vm1423_vm3, %v1618_v39, 0 }
 0x241   : > { %v2309_v42 = vpop.f32.mrf.mxu0  ;;  %v2317_v43 = vpop.f32.mrf.mxu1 }
 0x2ee   : > { %v1225_v47 = vpop.f32.mrf.mxu0  ;;  %v1271_v48 = vpop.f32.mrf.mxu1 }
 0x2ef   : > { %v1376_v49 = vsel %vm1373_vm4, %v1225_v47, -inf  ;;  %v1377_v53 = vsel %vm1373_vm4, %v1271_v48, -inf  ;;  %v1619_v47 = vld [vmem:[%s3046_s6 + $0x8] sm:$0xf] }
 0x2f0   : > { %v2322_v50 = vpop.f32.mrf.mxu0  ;;  %v2328_v51 = vpop.f32.mrf.mxu1  ;;  %v1380_v52 = vsel %vm1184_vm2, %v1376_v49, -inf  ;;  %v1383_v58 = vsel %vm1184_vm2, %v1377_v53, -inf }
 0x2f1   : > { %1381 = vmax.xlane.f32.xlu1 %v1380_v52  ;;  %v1717_v51 = vsel %vm1423_vm3, %v1619_v47, 0  ;;  %v2475_v47 = vld [vmem:[%s3050_s10 + $0x8] sm:$0xff]  }
 0x2f2   : > { %v1228_v54 = vpop.f32.mrf.mxu0  ;;  %v1274_v55 = vpop.f32.mrf.mxu1 }
 0x2f3   : > { %v1620_v55 = vld [vmem:[%s3046_s6 + $0xc] sm:$0xf] }
 0x2f4   : > { %v2323_v56 = vpop.f32.mrf.mxu0  ;;  %v2329_v57 = vpop.f32.mrf.mxu1 }
 0x2f5   : > { %1384 = vmax.xlane.f32.xlu1 %v1383_v58 }
 0x2f6   : > { %v1317_v59 = vpop.f32.mrf.mxu0  ;;  %v1363_v60 = vpop.f32.mrf.mxu1 }
 0x2f7   : > { %v1378_v61 = vsel %vm1373_vm4, %v1317_v59, -inf  ;;  %v1379_v62 = vsel %vm1373_vm4, %v1363_v60, -inf  ;;  %v1763_v60 = vsel %vm1423_vm3, %v1620_v55, 0 }
 0x2f8   : > { %v2334_v63 = vpop.f32.mrf.mxu0  ;;  %v2340_v1 = vpop.f32.mrf.mxu1  ;;  %v1389_v2 = vsel %vm1184_vm2, %v1379_v62, -inf  ;;  %v1386_v3 = vsel %vm1184_vm2, %v1378_v61, -inf }
 0x2f9   : > { %1390 = vmax.xlane.f32.xlu1 %v1389_v2  ;;  %1387 = vmax.xlane.f32.xlu0 %v1386_v3 }
 0x2fa   : > { %v1320_v4 = vpop.f32.mrf.mxu0  ;;  %v1366_v5 = vpop.f32.mrf.mxu1 }
 0x2fc   : > { %v2335_v6 = vpop.f32.mrf.mxu0  ;;  %v2341_v7 = vpop.f32.mrf.mxu1 }
 0x37a   : > { %v1382_v8 = vpop.xlane.xlu1 %1381 }
 0x37b   : > { %v1392_v10 = vsub.f32 %v1376_v49, %v1382_v8 }
 0x37d   : > { %v1396_v11 = vmul.f32 1.442695, %v1392_v10 }
 0x37e   : > { %v1385_v12 = vpop.xlane.xlu1 %1384 }
 0x37f   : > { %2483 = vpow2.f32 %v1396_v11  ;;  %v1393_v13 = vsub.f32 %v1377_v53, %v1385_v12 }
 0x381   : > { %v1398_v14 = vmul.f32 1.442695, %v1393_v13 }
 0x382   : > { %v1391_v15 = vpop.xlane.xlu1 %1390  ;;  %v1388_v16 = vpop.xlane.xlu0 %1387 }
 0x383   : > { %2485 = vpow2.f32 %v1398_v14  ;;  %v1395_v17 = vsub.f32 %v1379_v62, %v1391_v15  ;;  %v1394_v18 = vsub.f32 %v1378_v61, %v1388_v16 }
 0x385   : > { %v1402_v19 = vmul.f32 1.442695, %v1395_v17  ;;  %v1400_v20 = vmul.f32 1.442695, %v1394_v18 }
 0x387   : > { %2487 = vpow2.f32 %v1402_v19 }
 0x388   : > { %2489 = vpow2.f32 %v1400_v20 }
 0x38c   : > { %v2484_v22 = vpop.eup %2483 }
 0x38d   : > { %v1404_v23 = vsel %vm1184_vm2, %v2484_v22, 0.0  ;;  %v1416_v24 = vpack.c.bf16 %v2484_v22, %v2484_v22 }
 0x38e   : > { %1405 = vadd.xlane.f32.xlu0 %v1404_v23 }
 0x38f   : > { %2345 = vmatmul.mubr.msk.bf16.vlgmr.msra.gmra.mxu0 %vm1184_vm2, %v1416_v24 }
 0x390   : > { %v2486_v27 = vpop.eup %2485  ;;  %2355 = vmatpush3.bf16.msra.mxu0 %v1517_v25  ;;  %2356 = vmatprep.mubr.msk.bf16.mxu0 %vm2566_vm1, %v2565_v9 }
 0x391   : > { %v1407_v28 = vsel %vm1184_vm2, %v2486_v27, 0.0  ;;  %v1417_v29 = vpack.c.bf16 %v2486_v27, %v2486_v27  ;;  %2366 = vmatprep.subr.bf16.mxu0 %v2565_v9 }
 0x392   : > { %1408 = vadd.xlane.f32.xlu1 %v1407_v28 }
 0x393   : > { %2351 = vmatmul.mubr.msk.bf16.vlgmr.msra.gmra.mxu1 %vm1184_vm2, %v1417_v29 }
 0x394   : > { %v2488_v31 = vpop.eup %2487  ;;  %2361 = vmatpush3.bf16.msra.mxu1 %v1563_v30  ;;  %2362 = vmatprep.mubr.msk.bf16.mxu1 %vm2566_vm1, %v2565_v9 }
 0x395   : > { %v2490_v32 = vpop.eup %2489  ;;  %v1413_v33 = vsel %vm1184_vm2, %v2488_v31, 0.0  ;;  %2372 = vmatprep.subr.bf16.mxu1 %v2565_v9  ;;  %v1419_v36 = vpack.c.bf16 %v2488_v31, %v2488_v31 }
 0x396   : > { %1414 = vadd.xlane.f32.xlu1 %v1413_v33  ;;  %v1410_v34 = vsel %vm1184_vm2, %v2490_v32, 0.0  ;;  %v1418_v35 = vpack.c.bf16 %v2490_v32, %v2490_v32  ;;  %v2137_v33 = vld [vmem:[%s3047_s7] ss:$0 sm:$0xff] }
 0x397   : > { %1411 = vadd.xlane.f32.xlu0 %v1410_v34 }
 0x398   : > { %2357 = vmatmul.mubr.msk.bf16.vlgmr.msra.gmra.mxu0 %vm1184_vm2, %v1418_v35 }
 0x399   : > { %2368 = vmatprep.mubr.msk.bf16.mxu0 %vm2566_vm1, %v2565_v9  ;;  %2367 = vmatpush3.bf16.msra.mxu0 %v1625_v38 }
 0x39a   : > { %2378 = vmatprep.subr.bf16.mxu0 %v2565_v9 }
 0x39b   : > { %2363 = vmatmul.mubr.msk.bf16.vlgmr.msra.gmra.mxu1 %vm1184_vm2, %v1419_v36 }
 0x39c   : > { %2374 = vmatprep.mubr.msk.bf16.mxu1 %vm2566_vm1, %v2565_v9  ;;  %2373 = vmatpush3.bf16.msra.mxu1 %v1671_v40 }
 0x39d   : > { %2384 = vmatprep.subr.bf16.mxu1 %v2565_v9 }
 0x417   : > { %v1406_v41 = vpop.xlane.xlu0 %1405 }
 0x418   : > { %2491 = vrcp.f32 %v1406_v41 }
 0x41b   : > { %v1409_v42 = vpop.xlane.xlu1 %1408 }
 0x41c   : > { %2493 = vrcp.f32 %v1409_v42 }
 0x41f   : > { %v1415_v44 = vpop.xlane.xlu1 %1414 }
 0x420   : > { %v1412_v43 = vpop.xlane.xlu0 %1411 }
 0x421   : > { %2495 = vrcp.f32 %v1412_v43 }
 0x422   : > { %2497 = vrcp.f32 %v1415_v44 }
 0x425   : > { %v2492_v45 = vpop.eup %2491 }
 0x429   : > { %v2494_v52 = vpop.eup %2493 }
 0x42e   : > { %v2496_v62 = vpop.eup %2495 }
 0x42f   : > { %v2498_v4 = vpop.eup %2497 }
 0x44f   : > { %v1461_v46 = vpop.f32.mrf.mxu0 }
 0x450   : > { %v1609_v48 = vmul.f32 %v2492_v45, %v1461_v46 }
 0x451   : > { %v2346_v49 = vpop.f32.mrf.mxu0 }
 0x452   : > { %v1613_v50 = vpack.c.bf16 %v1609_v48, %v1609_v48  ;;  %v2476_v48 = vld [vmem:[%s3050_s10] sm:$0xff]  }
 0x453   : > { %v1464_v53 = vpop.f32.mrf.mxu0  ;;  %v1507_v54 = vpop.f32.mrf.mxu1 }
 0x454   : > { %v1610_v56 = vmul.f32 %v2494_v52, %v1507_v54  ;;  %2369 = vmatmul.mubr.msk.bf16.vlgmr.msra.gmra.mxu0 %vm1184_vm2, %v1613_v50  ;;  %v2138_v52 = vld [vmem:[%s3048_s8] ss:$0 sm:$0xff] }
 0x455   : > { %v2347_v57 = vpop.f32.mrf.mxu0  ;;  %v2352_v58 = vpop.f32.mrf.mxu1  ;;  %2379 = vmatpush3.bf16.msra.mxu0 %v1717_v51  ;;  %2380 = vmatprep.mubr.msk.bf16.mxu0 %vm2566_vm1, %v2565_v9  ;;  %v2139_v54 = vld [vmem:[%s3049_s9] ss:$0 sm:$0xff] }
 0x456   : > { %v1614_v59 = vpack.c.bf16 %v1610_v56, %v1610_v56  ;;  %2390 = vmatprep.subr.bf16.mxu0 %v2565_v9  ;;  %v2477_v58 = vld [vmem:[%s3052_s12 + $0x18] sm:$0xff]  }
 0x457   : > { %v1510_v61 = vpop.f32.mrf.mxu1 }
 0x458   : > { %v1553_v63 = vpop.f32.mrf.mxu0  ;;  %2375 = vmatmul.mubr.msk.bf16.vlgmr.msra.gmra.mxu1 %vm1184_vm2, %v1614_v59  ;;  %v2478_v59 = vld [vmem:[%s3052_s12 + $0x10] sm:$0xff]   ;;  %v2480_v61 = vld [vmem:[%s3052_s12] sm:$0xff]  }
 0x459   : > { %v1611_v1 = vmul.f32 %v2496_v62, %v1553_v63  ;;  %v2353_v2 = vpop.f32.mrf.mxu1  ;;  %2385 = vmatpush3.bf16.msra.mxu1 %v1763_v60  ;;  %2386 = vmatprep.mubr.msk.bf16.mxu1 %vm2566_vm1, %v2565_v9  ;;  %v2479_v60 = vld [vmem:[%s3052_s12 + $0x8] sm:$0xff]   ;;  %v2140_v62 = vld [vmem:[%s3051_s11] ss:$0 sm:$0xff] }
 0x45a   : > { %v2358_v3 = vpop.f32.mrf.mxu0  ;;  %2398 = vmatprep.subr.bf16.mxu1 %v2565_v9 }
 0x45b   : > { %v1615_v5 = vpack.c.bf16 %v1611_v1, %v1611_v1  ;;  %v1599_v6 = vpop.f32.mrf.mxu1 }
 0x45c   : > { %v1556_v7 = vpop.f32.mrf.mxu0  ;;  %v1612_v8 = vmul.f32 %v2498_v4, %v1599_v6 }
 0x45d   : > { %2381 = vmatmul.mubr.msk.bf16.vlgmr.msra.gmra.mxu0 %vm1184_vm2, %v1615_v5  ;;  %v2364_v10 = vpop.f32.mrf.mxu1 }
 0x45e   : > { %v1616_v11 = vpack.c.bf16 %v1612_v8, %v1612_v8  ;;  %v2359_v12 = vpop.f32.mrf.mxu0  ;;  %2394 = vmatprep.mubr.msk.bf16.mxu0 %vm2566_vm1, %v2565_v9  ;;  %2391 = vmatpush3.bf16.msra.mxu0 %v2475_v47 }
 0x45f   : > { %v1602_v13 = vpop.f32.mrf.mxu1  ;;  %2392 = vmatprep.subr.bf16.mxu0 %v2565_v9 }
 0x460   : > { %2387 = vmatmul.mubr.msk.bf16.vlgmr.msra.gmra.mxu1 %vm1184_vm2, %v1616_v11  ;;  %v2144_v11 = vld [vmem:[%s3053_s13] ss:$0 sm:$0xff] }
 0x461   : > { %v2365_v14 = vpop.f32.mrf.mxu1  ;;  %2406 = vmatprep.mubr.msk.bf16.mxu1 %vm2566_vm1, %v2565_v9  ;;  %2399 = vmatpush3.bf16.msra.mxu1 %v2477_v58 }
 0x462   : > { %2393 = vmatpush3.bf16.msra.mxu0 %v2476_v48  ;;  %2400 = vmatprep.subr.bf16.mxu1 %v2565_v9 }
 0x465   : > { %2401 = vmatpush3.bf16.msra.mxu1 %v2478_v59 }
 0x466   : > { %2402 = vmatprep.subr.bf16.mxu1 %v2565_v9 }
 0x469   : > { %2403 = vmatpush3.bf16.msra.mxu1 %v2479_v60 }
 0x46a   : > { %2404 = vmatprep.subr.bf16.mxu1 %v2565_v9 }
 0x46d   : > { %2405 = vmatpush3.bf16.msra.mxu1 %v2480_v61 }
 0x514   : > { %v1661_v15 = vpop.f32.mrf.mxu0 }
 0x515   : > { %v1805_v23 = vsel %vm467_vm0, %v1661_v15, 0.0 }
 0x516   : > { %v2370_v16 = vpop.f32.mrf.mxu0 }
 0x518   : > { %v1664_v17 = vpop.f32.mrf.mxu0  ;;  %v1707_v18 = vpop.f32.mrf.mxu1 }
 0x519   : > { %v1806_v21 = vsel %vm467_vm0, %v1707_v18, 0.0 }
 0x51a   : > { %v2371_v19 = vpop.f32.mrf.mxu0  ;;  %v2376_v20 = vpop.f32.mrf.mxu1  ;;  %v1807_v25 = vadd.f32 %v1806_v21, %v1805_v23 }
 0x51c   : > { %v1710_v22 = vpop.f32.mrf.mxu1 }
 0x51d   : > { %v1753_v24 = vpop.f32.mrf.mxu0 }
 0x51e   : > { %v1808_v26 = vsel %vm467_vm0, %v1753_v24, 0.0  ;;  %v2377_v27 = vpop.f32.mrf.mxu1 }
 0x51f   : > { %v2382_v28 = vpop.f32.mrf.mxu0  ;;  %v1809_v29 = vadd.f32 %v1808_v26, %v1807_v25 }
 0x520   : > { %v1799_v30 = vpop.f32.mrf.mxu1 }
 0x521   : > { %v1756_v31 = vpop.f32.mrf.mxu0  ;;  %v1810_v32 = vsel %vm467_vm0, %v1799_v30, 0.0 }
 0x522   : > { %v1811_v34 = vadd.f32 %v1810_v32, %v1809_v29  ;;  %v2388_v35 = vpop.f32.mrf.mxu1 }
 0x523   : > { %v2383_v36 = vpop.f32.mrf.mxu0 }
 0x524   : > { %v1819_v37 = vadd.f32 %v2137_v33, %v1811_v34  ;;  %v1802_v38 = vpop.f32.mrf.mxu1 }
 0x526   : > { %v2389_v39 = vpop.f32.mrf.mxu1  ;;  %v1820_v40 = vadd.f32 %v1819_v37, %v2696_v0 }
 0x528   : > { %v1823_v41 = vsel %vm467_vm0, %v1820_v40, 0.0 }
 0x529   : > { %1824 = vadd.xlane.f32.xlu0 %v1823_v41 }
 0x5b2   : > { %v1825_v42 = vpop.xlane.xlu0 %1824 }
 0x5b3   : > { %v1826_v43 = vmul.f32 0.03125, %v1825_v42 }
 0x5b5   : > { %v1827_v44 = vsub.f32 %v1820_v40, %v1826_v43 }
 0x5b7   : > { %v1828_v45 = vmul.f32 %v1827_v44, %v1827_v44 }
 0x5b9   : > { %v1829_v46 = vsel %vm467_vm0, %v1828_v45, 0.0 }
 0x5ba   : > { %1830 = vadd.xlane.f32.xlu1 %v1829_v46 }
 0x643   : > { %v1831_v0 = vpop.xlane.xlu1 %1830 }
 0x644   : > { %v1832_v49 = vmul.f32 0.03125, %v1831_v0 }
 0x646   : > { %v1833_v50 = vadd.f32 1e-05, %v1832_v49 }
 0x648   : > { %2499 = vrsqrt.f32 %v1833_v50 }
 0x655   : > { %v2500_v51 = vpop.eup %2499 }
 0x656   : > { %v1835_v53 = vmul.f32 %v2500_v51, %v1827_v44 }
 0x658   : > { %v1842_v55 = vmul.f32 %v2138_v52, %v1835_v53 }
 0x65a   : > { %v1849_v56 = vadd.f32 %v2139_v54, %v1842_v55 }
 0x65c   : > { %v1850_v57 = vpack.c.bf16 %v1849_v56, %v1849_v56 }
 0x65e   : > { %2395 = vmatmul.mubr.msk.bf16.vlgmr.msra.gmra.mxu0 %vm467_vm0, %v1850_v57 }
 0x71e   : > { %v1911_v63 = vpop.f32.mrf.mxu0 }
 0x71f   : > { %v1912_v1 = vadd.f32 %v2140_v62, %v1911_v63 }
 0x720   : > { %v2396_v2 = vpop.f32.mrf.mxu0 }
 0x721   : > { %v1918_v3 = vmul.f32 0.70710677, %v1912_v1  ;;  %v1917_v9 = vmul.f32 0.5, %v1912_v1 }
 0x722   : > { %v1914_v4 = vpop.f32.mrf.mxu0 }
 0x723   : > { %2501 = verf.f32 %v1918_v3 }
 0x724   : > { %v2397_v5 = vpop.f32.mrf.mxu0 }
 0x730   : > { %v2502_v6 = vpop.eup %2501 }
 0x731   : > { %v1920_v7 = vadd.f32 1.0, %v2502_v6 }
 0x733   : > { %v1921_v8 = vmul.f32 %v1920_v7, %v1917_v9 }
 0x735   : > { %v1922_v10 = vpack.c.bf16 %v1921_v8, %v1921_v8 }
 0x737   : > { %2407 = vmatmul.mubr.msk.bf16.vlgmr.msra.gmra.mxu1 %vm1962_vm5, %v1922_v10 }
 0x7f7   : > { %v2000_v12 = vpop.f32.mrf.mxu1 }
 0x7f8   : > { %v2001_v13 = vadd.f32 %v2144_v11, %v2000_v12 }
 0x7f9   : > { %v2408_v14 = vpop.f32.mrf.mxu1 }
 0x7fa   : > { %v2006_v15 = vadd.f32 %v2001_v13, %v1820_v40 }
 0x7fb   : > { %v2003_v16 = vpop.f32.mrf.mxu1 }
 0x7fc   : > { %2007 = vst.msk [vmem:[%s458_s28] sm:$0xff] %vm467_vm0, %v2006_v15 }
 0x7fd   : > { %v2409_v17 = vpop.f32.mrf.mxu1 }
 0x7fe   : > { %2516 = shalt.err (!%p2513_p3)
}
 0x7ff   : > { %s2517_s0 = scalar_lea.hbm %s2998_s2, 128  ;;  %s2521_s20 = scalar_lea.hbm %s3054_s14, 256 }
 0x800   : > { %p2518_p4 = scmp.ne.s32.totalorder %s2998_s2, %s2517_s0  ;;  %p2522_p9 = scmp.lt.s32.totalorder %s2998_s2, %s3054_s14 }
 0x801   : > { %p2523_p10 = scmp.lt.s32.totalorder %s2521_s20, %s2517_s0 }
 0x802   : > { %p2519_p7 = pnand %p2518_p4, %p2681_p5 }
 0x803   : > { %p2524_p11 = por %p2523_p10, %p2522_p9 }
 0x804   : > { %p2520_p8 = pneg %p2519_p7 }
 0x806   : > { %p2525_p12 = pnand %p2524_p11, %p2520_p8 }
 0x808   : > { %2528 = shalt.err (!%p2525_p12)
}
 0x809   : > { %2410 = dma.vmem_to_hbm [thread:$0]  (%p2681_p5), %s3000_s18, 128, %s2998_s2, %s2009_s17  }
 0x80a PF: > { %p2416_p13 = scmp.ge.s32.totalorder %s2563_s16, 2  ;;  %s2034_s25 = sand.u32 1, %s2551_s29  }
 0x80b   : > { %s2035_s3 = scalar_lea.sflag [#allocation3], %s2034_s25 }
 0x80c   : > { %p2413_p0 = pnand %p2416_p13, %p2685_p6 }
 0x80e   : > { %p2414_p1 = pneg %p2413_p0 }
 0x810   : > { %2546 = dma.done.wait (%p2414_p1), %s2035_s3, 128  }
 0x811   : > { %2548 = vsyncadd (%p2414_p1), %s2035_s3, 4294967168  ;;  %p24_p2 = scmp.ge.s32.totalorder %s2668_s19, 4   ;;  %s3065_s29 = smov %s2555_s30 }
 0x812   : > { %s3066_s30 = smov %s2559_s15  ;;  %s3067_s15 = smov %s2679_s22 }
 0x813   : > { %s3068_s16 = smov %s2668_s19  ;;  %26 = sbr.rel (!%p24_p2) target bundleno = 8 (0x8), region = 111 }
 0x818   :  { %2040 = vsyncpa [#allocation3], 1 }
 0x819   :  { %2042 = vsyncpa [#allocation3 + $0x1], 1 }

</bundles_post_ra>
